<compile_context>
chip_gen: v7x
topology: tpu7x:2x2x1
jax: 0.10.0
libtpu: 0.0.40
codegen_flags: <defaults>
</compile_context>

<pallas_src>
import functools

import jax
import jax.numpy as jnp
from jax.experimental import pallas as pl
from jax.experimental.pallas import tpu as pltpu


def _kd_rowwise_kernel(logits_ref, teacher_ref, kl_ref):
    # (tm, V) student / teacher logits for this row tile.
    s = logits_ref[...].astype(jnp.float32)
    t = teacher_ref[...].astype(jnp.float32)

    s_max = jnp.max(s, axis=-1, keepdims=True)
    t_max = jnp.max(t, axis=-1, keepdims=True)
    s_shift = s - s_max
    t_shift = t - t_max

    exp_s = jnp.exp(s_shift)               # V-wide exp #1 (student normalizer)
    exp_t = jnp.exp(t_shift)               # V-wide exp #2 (teacher probs, unnormalized)
    sum_s = jnp.sum(exp_s, axis=-1, keepdims=True)
    sum_t = jnp.sum(exp_t, axis=-1, keepdims=True)
    s_lse = jnp.log(sum_s)                 # per-row scalars only
    t_lse = jnp.log(sum_t)

    # KL(p_t || p_s) = sum_v p_t * (log p_t - log p_s)
    #               = sum_v exp_t * (t_shift - s_shift) / sum_t + (s_lse - t_lse)
    num = jnp.sum(exp_t * (t_shift - s_shift), axis=-1, keepdims=True)  # (tm, 1)
    kl_ref[...] = num / sum_t + (s_lse - t_lse)


def _round_up(x, m):
    return (x + m - 1) // m * m


def _pick_tile_rows(num_rows, vocab, itemsize):
    # Target ~2 MiB per input block: 2 inputs x 2 pipeline buffers + a handful of
    # f32 tile-sized temporaries stays < ~24 MiB live VMEM (safe on v7x's 64 MiB,
    # plenty of headroom on v5e/v6e) while being large enough to hit HBM roofline.
    target_block_bytes = 2 * 1024 * 1024
    tr = target_block_bytes // max(vocab * itemsize, 1)
    tr = max(16, min(int(tr), 2048))
    tr = _round_up(tr, 16)                      # legal sublane count for f32 and bf16
    tr = min(tr, _round_up(num_rows, 16))       # don't exceed (padded) row count
    return tr


@jax.jit
def distil_loss(logits, teacher_logits, mask):
    """Masked KL distillation loss.

    logits, teacher_logits: (B, S, V)  (f32 or bf16; bf16 is streamed as bf16)
    mask: (B, S)  (1.0 = valid token, 0.0 = padding)
    returns: scalar f32 loss = sum_tokens mask * KL(p_teacher || p_student) / sum(mask)
    """
    B, S, V = logits.shape
    R = B * S

    logits2d = logits.reshape(R, V)
    teacher2d = teacher_logits.reshape(R, V)

    itemsize = jnp.dtype(logits.dtype).itemsize
    tile_rows = _pick_tile_rows(R, V, itemsize)
    R_pad = _round_up(R, tile_rows)
    if R_pad != R:
        pad = R_pad - R
        # Zero-logit padded rows give KL(uniform || uniform) == 0 and are excluded
        # by the mask in the wrapper reduction anyway.
        logits2d = jnp.pad(logits2d, ((0, pad), (0, 0)))
        teacher2d = jnp.pad(teacher2d, ((0, pad), (0, 0)))

    grid = (R_pad // tile_rows,)

    kl = pl.pallas_call(
        _kd_rowwise_kernel,
        out_shape=jax.ShapeDtypeStruct((R_pad, 1), jnp.float32),
        grid_spec=pltpu.PrefetchScalarGridSpec(
            num_scalar_prefetch=0,
            grid=grid,
            in_specs=[
                pl.BlockSpec((tile_rows, V), lambda i: (i, 0)),
                pl.BlockSpec((tile_rows, V), lambda i: (i, 0)),
            ],
            out_specs=pl.BlockSpec((tile_rows, 1), lambda i: (i, 0)),
        ),
        compiler_params=pltpu.CompilerParams(
            dimension_semantics=("parallel",),       # distinct output block per step
            vmem_limit_bytes=64 * 1024 * 1024,       # explicit: v5e default is 16 MiB
        ),
    )(logits2d, teacher2d)

    # Tiny epilogue (R floats): mask weighting + mean in plain XLA.
    m = mask.reshape(R).astype(jnp.float32)
    loss_sum = jnp.sum(kl[:R, 0] * m)
    return (loss_sum / jnp.maximum(jnp.sum(m), 1.0)).astype(jnp.float32)


def _reference(logits, teacher_logits, mask):
    s = logits.astype(jnp.float32)
    t = teacher_logits.astype(jnp.float32)
    log_ps = jax.nn.log_softmax(s, axis=-1)
    log_pt = jax.nn.log_softmax(t, axis=-1)
    kl = jnp.sum(jnp.exp(log_pt) * (log_pt - log_ps), axis=-1)
    m = mask.astype(jnp.float32)
    return jnp.sum(kl * m) / jnp.maximum(jnp.sum(m), 1.0)


if __name__ == "__main__":
    key = jax.random.PRNGKey(0)
    k1, k2, k3 = jax.random.split(key, 3)

    B, S, V = 2, 8, 128  # small shapes: batch=2, seq=8, vocab=128 (lane-aligned)
    logits = jax.random.normal(k1, (B, S, V), dtype=jnp.float32)
    teacher_logits = jax.random.normal(k2, (B, S, V), dtype=jnp.float32)
    mask = (jax.random.uniform(k3, (B, S)) > 0.25).astype(jnp.float32)

    loss = distil_loss(logits, teacher_logits, mask)
    jax.block_until_ready(loss)

    ref = _reference(logits, teacher_logits, mask)
    assert jnp.allclose(loss, ref, atol=1e-4, rtol=1e-4), (loss, ref)

    print("KERNEL_OK")
</pallas_src>

<mosaic_0001>
module attributes {stable_mosaic.version = 11 : i64} {
  func.func @_kd_rowwise_kernel(%arg0: i32, %arg1: memref<16x128xf32, #tpu.memory_space<vmem>>, %arg2: memref<16x128xf32, #tpu.memory_space<vmem>>, %arg3: memref<16x1xf32, #tpu.memory_space<vmem>>) attributes {dimension_semantics = [#tpu.dimension_semantics<parallel>], iteration_bounds = array<i64: 1>, scalar_prefetch = 0 : i64, scratch_operands = 0 : i64, tpu.core_type = #tpu.core_type<tc>, window_params = [{transform_indices = @transform_0, window_bounds = array<i64: 16, 128>}, {transform_indices = @transform_1, window_bounds = array<i64: 16, 128>}, {transform_indices = @transform_2, window_bounds = array<i64: 16, 1>}]} {
    %c0 = arith.constant 0 : index
    %c0_0 = arith.constant 0 : index
    %0 = vector.load %arg1[%c0, %c0_0] : memref<16x128xf32, #tpu.memory_space<vmem>>, vector<16x128xf32>
    %c0_1 = arith.constant 0 : index
    %c0_2 = arith.constant 0 : index
    %1 = vector.load %arg2[%c0_1, %c0_2] : memref<16x128xf32, #tpu.memory_space<vmem>>, vector<16x128xf32>
    %cst = arith.constant dense<0xFF800000> : vector<16xf32>
    %2 = vector.multi_reduction <maximumf>, %0, %cst [1] : vector<16x128xf32> to vector<16xf32>
    %3 = vector.shape_cast %2 : vector<16xf32> to vector<16x1xf32>
    %cst_3 = arith.constant dense<0xFF800000> : vector<16xf32>
    %4 = vector.multi_reduction <maximumf>, %1, %cst_3 [1] : vector<16x128xf32> to vector<16xf32>
    %5 = vector.shape_cast %4 : vector<16xf32> to vector<16x1xf32>
    %6 = vector.broadcast %3 : vector<16x1xf32> to vector<16x128xf32>
    %7 = arith.subf %0, %6 : vector<16x128xf32>
    %8 = vector.broadcast %5 : vector<16x1xf32> to vector<16x128xf32>
    %9 = arith.subf %1, %8 : vector<16x128xf32>
    %10 = math.exp %7 : vector<16x128xf32>
    %11 = math.exp %9 : vector<16x128xf32>
    %cst_4 = arith.constant dense<0.000000e+00> : vector<16xf32>
    %12 = vector.multi_reduction <add>, %10, %cst_4 [1] : vector<16x128xf32> to vector<16xf32>
    %13 = vector.shape_cast %12 : vector<16xf32> to vector<16x1xf32>
    %cst_5 = arith.constant dense<0.000000e+00> : vector<16xf32>
    %14 = vector.multi_reduction <add>, %11, %cst_5 [1] : vector<16x128xf32> to vector<16xf32>
    %15 = vector.shape_cast %14 : vector<16xf32> to vector<16x1xf32>
    %16 = math.log %13 : vector<16x1xf32>
    %17 = math.log %15 : vector<16x1xf32>
    %18 = arith.subf %9, %7 : vector<16x128xf32>
    %19 = arith.mulf %11, %18 : vector<16x128xf32>
    %cst_6 = arith.constant dense<0.000000e+00> : vector<16xf32>
    %20 = vector.multi_reduction <add>, %19, %cst_6 [1] : vector<16x128xf32> to vector<16xf32>
    %21 = vector.shape_cast %20 : vector<16xf32> to vector<16x1xf32>
    %22 = arith.divf %21, %15 : vector<16x1xf32>
    %23 = arith.subf %16, %17 : vector<16x1xf32>
    %24 = arith.addf %22, %23 : vector<16x1xf32>
    %c0_7 = arith.constant 0 : index
    %c0_8 = arith.constant 0 : index
    %25 = vector.load %arg3[%c0_7, %c0_8] : memref<16x1xf32, #tpu.memory_space<vmem>>, vector<16x1xf32>
    tpu.vector_store %arg3[%c0_7, %c0_8], %24 {strides = array<i32>} : memref<16x1xf32, #tpu.memory_space<vmem>>, vector<16x1xf32>,
    return
  }
  func.func @transform_0(%arg0: i32) -> (i32, i32) {
    %c0_i32 = arith.constant 0 : i32
    %c0_i32_0 = arith.constant 0 : i32
    return %arg0, %c0_i32 : i32, i32
  }
  func.func @transform_1(%arg0: i32) -> (i32, i32) {
    %c0_i32 = arith.constant 0 : i32
    %c0_i32_0 = arith.constant 0 : i32
    return %arg0, %c0_i32 : i32, i32
  }
  func.func @transform_2(%arg0: i32) -> (i32, i32) {
    %c0_i32 = arith.constant 0 : i32
    %c0_i32_0 = arith.constant 0 : i32
    return %arg0, %c0_i32 : i32, i32
  }
}

</mosaic_0001>

<bundles_post_ra>
// kernel: distil_loss.1
= control target key start
LH: loop header
LB: loop body
LE: loop exit
PB: predicated region body
PF: predicated region fallthrough
CT: control target
= control target key end

     0   :  { %7 = vsyncpa [#allocation3], 0  ;;  %s279_s0 = inlined_call_operand.hbm [shape: f32[16,128], index: 0, kind: input, shape index: {}]   ;;  %s280_s1 = inlined_call_operand.hbm [shape: f32[16,128], index: 1, kind: input, shape index: {}]   ;;  %s281_s2 = inlined_call_operand.hbm [shape: f32[16,1], index: 2, kind: output, shape index: {}]  }
   0x1   :  { %8 = vsyncpa [#allocation6], 0 }
   0x2   :  { %9 = vsyncpa [#allocation4], 0  ;;  %s214_s9 = smov [#allocation2]   ;;  %s142_s13 = scalar_lea.hbm %s279_s0, 256 }
   0x3   :  { %s15_s10 = sshll.u32 %s214_s9, 4  ;;  %p143_p0 = scmp.ne.s32.totalorder %s279_s0, %s142_s13  ;;  %s16_s10 = int_to_ptr.vmem [resolvable:$true] %s15_s10 }
   0x4   :  { %p146_p1 = scmp.lt.u32.totalorder %s142_s13, %s279_s0 }
   0x6   :  { %p148_p2 = pnand %p146_p1, %p143_p0 }
   0x8   :  { %151 = shalt.err (!%p148_p2)
}
   0x9   :  { %s152_s18 = scalar_lea.vmem %s16_s10, 256  ;;  %p157_p4 = scmp.lt.s32.totalorder %s16_s10, %s16_s10 }
   0xa   :  { %p153_p3 = scmp.ne.s32.totalorder %s16_s10, %s152_s18  ;;  %p158_p5 = scmp.lt.s32.totalorder %s152_s18, %s152_s18 }
   0xc   :  { %p159_p6 = por %p158_p5, %p157_p4 }
   0xe   :  { %p160_p7 = pnand %p159_p6, %p153_p3 }
  0x10   :  { %163 = shalt.err (!%p160_p7)
}
  0x11   :  { %s215_s19 = smov 128   ;;  %s216_s20 = smov 8  }
  0x12   :  { %21 = dma.hbm_to_vmem [thread:$0]  %s279_s0, 256, %s16_s10, [#allocation3], %s215_s19, %s215_s19, %s216_s20  }
  0x13   :  { %s217_s23 = smov [#allocation5]   ;;  %s164_s27 = scalar_lea.hbm %s280_s1, 256 }
  0x14   :  { %s27_s24 = sshll.u32 %s217_s23, 4  ;;  %p165_p8 = scmp.ne.s32.totalorder %s280_s1, %s164_s27  ;;  %s28_s24 = int_to_ptr.vmem [resolvable:$true] %s27_s24 }
  0x15   :  { %p168_p9 = scmp.lt.u32.totalorder %s164_s27, %s280_s1 }
  0x17   :  { %p170_p10 = pnand %p168_p9, %p165_p8 }
  0x19   :  { %173 = shalt.err (!%p170_p10)
}
  0x1a   :  { %s174_s4 = scalar_lea.vmem %s28_s24, 256  ;;  %p179_p12 = scmp.lt.s32.totalorder %s28_s24, %s28_s24 }
  0x1b   :  { %p175_p11 = scmp.ne.s32.totalorder %s28_s24, %s174_s4  ;;  %p180_p13 = scmp.lt.s32.totalorder %s174_s4, %s174_s4 }
  0x1d   :  { %p181_p0 = por %p180_p13, %p179_p12 }
  0x1f   :  { %p182_p1 = pnand %p181_p0, %p175_p11 }
  0x21   :  { %185 = shalt.err (!%p182_p1)
}
  0x22   :  { %33 = dma.hbm_to_vmem [thread:$0]  %s280_s1, 256, %s28_s24, [#allocation6], %s215_s19, %s215_s19, %s216_s20  }
  0x23   :  { %208 = dma.done.wait [#allocation3], 256  }
  0x24   :  { %209 = vsyncadd [#allocation3], 4294967040 }
  0x25   :  { %210 = dma.done.wait [#allocation6], 256  }
  0x26   :  { %211 = vsyncadd [#allocation6], 4294967040  ;;  %v42_v0 = vld [vmem:[#allocation5] sm:$0xff]  ;;  %v40_v1 = vld [vmem:[#allocation2] sm:$0xff]  ;;  %vm96_vm0 = vcmask 7168   ;;  %s218_s1 = smov [#allocation7]  }
  0x27   :  { %48 = vmax.xlane.f32.xlu1 %v42_v0  ;;  %44 = vmax.xlane.f32.xlu0 %v40_v1  ;;  %v43_v2 = vld [vmem:[#allocation5 + $0x8] sm:$0xff]  ;;  %v41_v3 = vld [vmem:[#allocation2 + $0x8] sm:$0xff]  ;;  %s104_s6 = sshll.u32 %s218_s1, 4  ;;  %s105_s6 = int_to_ptr.vmem [resolvable:$true] %s104_s6 }
  0x28   :  { %s186_s7 = scalar_lea.vmem %s105_s6, 256  ;;  %p191_p3 = scmp.lt.s32.totalorder %s105_s6, %s105_s6 }
  0x29   :  { %p187_p2 = scmp.ne.s32.totalorder %s105_s6, %s186_s7  ;;  %p192_p4 = scmp.lt.s32.totalorder %s186_s7, %s186_s7 }
  0x2b   :  { %50 = vmax.xlane.f32.xlu1 %v43_v2  ;;  %46 = vmax.xlane.f32.xlu0 %v41_v3  ;;  %p193_p5 = por %p192_p4, %p191_p3 }
  0x2d   :  { %p194_p6 = pnand %p193_p5, %p187_p2 }
  0xb4   :  { %v49_v4 = vpop.xlane.xlu1 %48  ;;  %v45_v5 = vpop.xlane.xlu0 %44 }
  0xb5   :  { %v54_v6 = vsub.f32 %v42_v0, %v49_v4  ;;  %v52_v7 = vsub.f32 %v40_v1, %v45_v5 }
  0xb7   :  { %v56_v8 = vmul.f32 1.442695, %v52_v7  ;;  %v60_v11 = vmul.f32 1.442695, %v54_v6  ;;  %v80_v19 = vsub.f32 %v54_v6, %v52_v7 }
  0xb8   :  { %v51_v9 = vpop.xlane.xlu1 %50  ;;  %v47_v10 = vpop.xlane.xlu0 %46 }
  0xb9   :  { %v53_v12 = vsub.f32 %v41_v3, %v47_v10  ;;  %122 = vpow2.f32 %v56_v8  ;;  %v55_v13 = vsub.f32 %v43_v2, %v51_v9 }
  0xba   :  { %124 = vpow2.f32 %v60_v11 }
  0xbb   :  { %v58_v14 = vmul.f32 1.442695, %v53_v12  ;;  %v62_v15 = vmul.f32 1.442695, %v55_v13  ;;  %v81_v22 = vsub.f32 %v55_v13, %v53_v12 }
  0xbd   :  { %126 = vpow2.f32 %v58_v14 }
  0xbe   :  { %128 = vpow2.f32 %v62_v15 }
  0xc3   :  { %v123_v16 = vpop.eup %122 }
  0xc4   :  { %64 = vadd.xlane.f32.xlu0 %v123_v16  ;;  %v125_v17 = vpop.eup %124 }
  0xc5   :  { %v82_v20 = vmul.f32 %v125_v17, %v80_v19 }
  0xc7   :  { %v127_v18 = vpop.eup %126 }
  0xc8   :  { %68 = vadd.xlane.f32.xlu0 %v125_v17  ;;  %66 = vadd.xlane.f32.xlu1 %v127_v18  ;;  %v129_v21 = vpop.eup %128 }
  0xc9   :  { %v83_v23 = vmul.f32 %v129_v21, %v81_v22 }
  0xcc   :  { %84 = vadd.xlane.f32.xlu0 %v82_v20  ;;  %70 = vadd.xlane.f32.xlu1 %v129_v21 }
  0xd0   :  { %86 = vadd.xlane.f32.xlu1 %v83_v23 }
 0x151   :  { %v65_v24 = vpop.xlane.xlu0 %64 }
 0x152   :  { %130 = vlog2.f32 %v65_v24 }
 0x155   :  { %v67_v25 = vpop.xlane.xlu1 %66  ;;  %v69_v26 = vpop.xlane.xlu0 %68 }
 0x156   :  { %132 = vlog2.f32 %v67_v25 }
 0x157   :  { %134 = vlog2.f32 %v69_v26 }
 0x158   :  { %136 = vrcp.f32 %v69_v26 }
 0x159   :  { %v71_v27 = vpop.xlane.xlu1 %70  ;;  %v85_v34 = vpop.xlane.xlu0 %84 }
 0x15a   :  { %138 = vlog2.f32 %v71_v27 }
 0x15b   :  { %140 = vrcp.f32 %v71_v27 }
 0x15c   :  { %v131_v28 = vpop.eup %130 }
 0x15d   :  { %v73_v32 = vmul.f32 0.6931472, %v131_v28  ;;  %v87_v42 = vpop.xlane.xlu1 %86 }
 0x160   :  { %v133_v29 = vpop.eup %132 }
 0x161   :  { %v135_v30 = vpop.eup %134  ;;  %v75_v39 = vmul.f32 0.6931472, %v133_v29 }
 0x162   :  { %v137_v31 = vpop.eup %136  ;;  %v77_v33 = vmul.f32 0.6931472, %v135_v30 }
 0x163   :  { %v89_v37 = vmul.f32 %v137_v31, %v85_v34 }
 0x164   :  { %v139_v35 = vpop.eup %138  ;;  %v92_v36 = vsub.f32 %v73_v32, %v77_v33 }
 0x165   :  { %v141_v38 = vpop.eup %140  ;;  %v79_v40 = vmul.f32 0.6931472, %v139_v35 }
 0x166   :  { %v94_v41 = vadd.f32 %v92_v36, %v89_v37  ;;  %v91_v44 = vmul.f32 %v141_v38, %v87_v42 }
 0x167   :  { %v93_v43 = vsub.f32 %v75_v39, %v79_v40 }
 0x168   :  { %97 = vst.msk [vmem:[#allocation7] sm:$0xff] %vm96_vm0, %v94_v41 }
 0x169   :  { %v95_v45 = vadd.f32 %v93_v43, %v91_v44 }
 0x16b   :  { %98 = vst.msk [vmem:[#allocation7 + $0x8] sm:$0xff] %vm96_vm0, %v95_v45 }
 0x16c   :  { %197 = shalt.err (!%p194_p6)
}
 0x16d   :  { %s198_s10 = scalar_lea.hbm %s281_s2, 256 }
 0x16e   :  { %p199_p7 = scmp.ne.s32.totalorder %s281_s2, %s198_s10  ;;  %p202_p8 = scmp.lt.u32.totalorder %s198_s10, %s281_s2 }
 0x170   :  { %p204_p9 = pnand %p202_p8, %p199_p7 }
 0x172   :  { %207 = shalt.err (!%p204_p9)
}
 0x173   :  { %110 = dma.vmem_to_hbm [thread:$0]  %s105_s6, 256, %s281_s2, [#allocation4], %s215_s19, %s215_s19, %s216_s20  }
 0x174   :  { %212 = dma.done.wait [#allocation4], 256  }
 0x175   :  { %213 = vsyncadd [#allocation4], 4294967040 }
 0x176   :  { %114 = vsyncpa [#allocation3], 1 }
 0x177   :  { %115 = vsyncpa [#allocation6], 1 }
 0x178   :  { %116 = vsyncpa [#allocation4], 1 }

</bundles_post_ra>
